<compile_context>
chip_gen: v7x
topology: tpu7x:2x2x1
jax: 0.10.0
libtpu: 0.0.40
codegen_flags: <defaults>
</compile_context>

<pallas_src>
import jax
import jax.numpy as jnp
from jax.experimental import pallas as pl
from jax.experimental.pallas import tpu as pltpu


_MAX_BLOCK_B = 8192                 # cap: ~12 MiB/step incl. temporaries at default dims
_ROW_MULT = 8                       # f32 sublane multiple for the x/out tiles
_VMEM_LIMIT_BYTES = 32 * 1024 * 1024   # explicit scoped VMEM (raises v5e's 16 MiB default)
_VMEM_BUDGET_BYTES = 20 * 1024 * 1024  # headroom below the limit for weights/misc


def _round_up(n, m):
    return ((n + m - 1) // m) * m


def _mlp_kernel(x_ref, w1_ref, b1_ref, w2_ref, b2_ref, w3_ref, b3_ref, o_ref):
    # x arrives f32 from HBM; cast to bf16 in-register for the MXU so the
    # wrapper never materializes a bf16 copy of x.
    x = x_ref[...].astype(jnp.bfloat16)

    # fc1 + ReLU: bf16 MXU operands, f32 accumulation; cast to bf16 before the
    # ReLU (numerically identical, halves activation vreg/store width).
    h1 = jnp.dot(x, w1_ref[...], preferred_element_type=jnp.float32) + b1_ref[...]
    h1 = jnp.maximum(h1.astype(jnp.bfloat16), 0.0)

    # fc2 + ReLU
    h2 = jnp.dot(h1, w2_ref[...], preferred_element_type=jnp.float32) + b2_ref[...]
    h2 = jnp.maximum(h2.astype(jnp.bfloat16), 0.0)

    # fc3 (no activation)
    out = jnp.dot(h2, w3_ref[...], preferred_element_type=jnp.float32) + b3_ref[...]
    o_ref[...] = out.astype(o_ref.dtype)


def _pick_block_b(batch, input_dim, h1, h2, output_dim):
    """Batch tile sized from a VMEM budget that includes in-kernel temporaries."""
    per_row_bytes = (
        2 * 4 * input_dim       # x f32 tile, double-buffered
        + 2 * 4 * output_dim    # out f32 tile, double-buffered
        + 6 * h1                # h1: f32 accumulator + bf16 activation
        + 6 * h2                # h2: f32 accumulator + bf16 activation
        + 4 * output_dim        # pre-cast f32 output temporary
    )
    block_b = max(_ROW_MULT,
                  (_VMEM_BUDGET_BYTES // per_row_bytes) // _ROW_MULT * _ROW_MULT)
    block_b = min(block_b, _MAX_BLOCK_B, _round_up(batch, _ROW_MULT))

    steps = pl.cdiv(batch, block_b)
    if steps > 1:
        # Even step count >= 2: both v7x TensorCores stay busy with no straggler;
        # also guarantees >=2 steps for DMA/compute pipelining. Harmless elsewhere.
        steps = steps + (steps % 2)
        block_b = max(_ROW_MULT, _round_up(pl.cdiv(batch, steps), _ROW_MULT))
    return block_b


def reward_prediction_forward(x, params, *, block_b=None):
    """Fused 3-layer MLP forward.

    x: [B, input_dim] float32
    params: dict with w1[in,128], b1[1,128], w2[128,64], b2[1,64],
            w3[64,out], b3[1,out]  (float32, PyTorch-equivalent values)
    returns: [B, output_dim] float32
    """
    if x.dtype != jnp.float32:
        x = x.astype(jnp.float32)
    B, input_dim = x.shape
    w1, b1 = params["w1"], params["b1"]
    w2, b2 = params["w2"], params["b2"]
    w3, b3 = params["w3"], params["b3"]
    h1, h2, output_dim = w1.shape[1], w2.shape[1], w3.shape[1]

    if block_b is None:
        block_b = _pick_block_b(B, input_dim, h1, h2, output_dim)
    assert block_b % _ROW_MULT == 0, "block_b must be a multiple of 8 (f32 sublanes)"

    # Ragged batches handled by Pallas edge-block masking; no pad copy of x.
    grid = (pl.cdiv(B, block_b),)

    # Weights are tiny (~50 KB total): cast once to bf16 in the wrapper.
    w1b, w2b, w3b = (w.astype(jnp.bfloat16) for w in (w1, w2, w3))
    b1f, b2f, b3f = (b.astype(jnp.float32) for b in (b1, b2, b3))

    flops = 2 * B * (input_dim * h1 + h1 * h2 + h2 * output_dim)
    bytes_accessed = (
        B * input_dim * 4                                     # x (f32 read)
        + B * output_dim * 4                                  # out (f32 write)
        + (input_dim * h1 + h1 * h2 + h2 * output_dim) * 2    # weights (bf16)
        + (h1 + h2 + output_dim) * 4                          # biases (f32)
    )

    def w_spec(shape):
        # Grid-invariant weights/biases: same block every step, Pallas skips re-DMA.
        return pl.BlockSpec(shape, lambda i: (0, 0))

    return pl.pallas_call(
        _mlp_kernel,
        out_shape=jax.ShapeDtypeStruct((B, output_dim), jnp.float32),
        grid_spec=pltpu.PrefetchScalarGridSpec(
            num_scalar_prefetch=0,
            grid=grid,
            in_specs=[
                pl.BlockSpec((block_b, input_dim), lambda i: (i, 0)),  # x tile
                w_spec((input_dim, h1)),                               # w1
                w_spec((1, h1)),                                       # b1
                w_spec((h1, h2)),                                      # w2
                w_spec((1, h2)),                                       # b2
                w_spec((h2, output_dim)),                              # w3
                w_spec((1, output_dim)),                               # b3
            ],
            out_specs=pl.BlockSpec((block_b, output_dim), lambda i: (i, 0)),
        ),
        compiler_params=pltpu.CompilerParams(
            dimension_semantics=("parallel",),
            vmem_limit_bytes=_VMEM_LIMIT_BYTES,
        ),
        cost_estimate=pl.CostEstimate(
            flops=flops, transcendentals=0, bytes_accessed=bytes_accessed),
    )(x, w1b, b1f, w2b, b2f, w3b, b3f)


def init_params(key, input_dim, output_dim):
    """Deterministic init mimicking PyTorch nn.Linear default
    (U[-1/sqrt(fan_in), 1/sqrt(fan_in)])."""
    dims = [(input_dim, 128), (128, 64), (64, output_dim)]
    params = {}
    for idx, (fan_in, fan_out) in enumerate(dims, start=1):
        key, kw, kb = jax.random.split(key, 3)
        bound = 1.0 / jnp.sqrt(float(fan_in))
        params[f"w{idx}"] = jax.random.uniform(
            kw, (fan_in, fan_out), jnp.float32, minval=-bound, maxval=bound
        )
        params[f"b{idx}"] = jax.random.uniform(
            kb, (1, fan_out), jnp.float32, minval=-bound, maxval=bound
        )
    return params


def _reference_forward(x, p):
    """Pure-JAX reference emulating the kernel's bf16-operand / f32-accumulate path."""
    def lin(a, w, b):
        return jnp.dot(a.astype(jnp.bfloat16), w.astype(jnp.bfloat16),
                       preferred_element_type=jnp.float32) + b
    h1 = jnp.maximum(lin(x, p["w1"], p["b1"]), 0.0)
    h2 = jnp.maximum(lin(h1, p["w2"], p["b2"]), 0.0)
    return lin(h2, p["w3"], p["b3"])


if __name__ == "__main__":
    input_dim = 32
    output_dim = 4
    batch = 8

    key = jax.random.PRNGKey(0)
    key, kx = jax.random.split(key)
    x = jax.random.normal(kx, (batch, input_dim), jnp.float32)
    params = init_params(key, input_dim, output_dim)

    out = reward_prediction_forward(x, params)
    out = jax.block_until_ready(out)

    ref = _reference_forward(x, params)
    assert out.shape == (batch, output_dim)
    # bf16 MXU operands with f32 accumulation -> compare at bf16-level tolerance.
    assert jnp.allclose(out, ref, atol=1e-2, rtol=1e-2), "mismatch vs. reference"

    print("KERNEL_OK")
</pallas_src>

<mosaic_0001>
module attributes {stable_mosaic.version = 11 : i64} {
  func.func @_mlp_kernel(%arg0: i32, %arg1: memref<8x32xf32, #tpu.memory_space<vmem>>, %arg2: memref<32x128xbf16, #tpu.memory_space<vmem>>, %arg3: memref<1x128xf32, #tpu.memory_space<vmem>>, %arg4: memref<128x64xbf16, #tpu.memory_space<vmem>>, %arg5: memref<1x64xf32, #tpu.memory_space<vmem>>, %arg6: memref<64x4xbf16, #tpu.memory_space<vmem>>, %arg7: memref<1x4xf32, #tpu.memory_space<vmem>>, %arg8: memref<8x4xf32, #tpu.memory_space<vmem>>) attributes {dimension_semantics = [#tpu.dimension_semantics<parallel>], iteration_bounds = array<i64: 1>, scalar_prefetch = 0 : i64, scratch_operands = 0 : i64, tpu.core_type = #tpu.core_type<tc>, window_params = [{transform_indices = @transform_0, window_bounds = array<i64: 8, 32>}, {pipeline_mode = #tpu.pipeline_mode<synchronous>, transform_indices = @transform_1, window_bounds = array<i64: 32, 128>}, {pipeline_mode = #tpu.pipeline_mode<synchronous>, transform_indices = @transform_2, window_bounds = array<i64: 1, 128>}, {pipeline_mode = #tpu.pipeline_mode<synchronous>, transform_indices = @transform_3, window_bounds = array<i64: 128, 64>}, {pipeline_mode = #tpu.pipeline_mode<synchronous>, transform_indices = @transform_4, window_bounds = array<i64: 1, 64>}, {pipeline_mode = #tpu.pipeline_mode<synchronous>, transform_indices = @transform_5, window_bounds = array<i64: 64, 4>}, {pipeline_mode = #tpu.pipeline_mode<synchronous>, transform_indices = @transform_6, window_bounds = array<i64: 1, 4>}, {transform_indices = @transform_7, window_bounds = array<i64: 8, 4>}]} {
    %c0 = arith.constant 0 : index
    %c0_0 = arith.constant 0 : index
    %0 = vector.load %arg1[%c0, %c0_0] : memref<8x32xf32, #tpu.memory_space<vmem>>, vector<8x32xf32>
    %1 = arith.truncf %0 : vector<8x32xf32> to vector<8x32xbf16>
    %c0_1 = arith.constant 0 : index
    %c0_2 = arith.constant 0 : index
    %2 = vector.load %arg2[%c0_1, %c0_2] : memref<32x128xbf16, #tpu.memory_space<vmem>>, vector<32x128xbf16>
    %cst = arith.constant dense<0.000000e+00> : vector<8x128xf32>
    %3 = tpu.matmul %1, %2, %cst {dimension_numbers = #tpu.dot_dimension_numbers<[1], [0], [0], [1], [0, 0, 1, 1], [], []>} : vector<8x32xbf16>, vector<32x128xbf16>, vector<8x128xf32> -> vector<8x128xf32>
    %c0_3 = arith.constant 0 : index
    %c0_4 = arith.constant 0 : index
    %4 = vector.load %arg3[%c0_3, %c0_4] : memref<1x128xf32, #tpu.memory_space<vmem>>, vector<1x128xf32>
    %5 = vector.broadcast %4 : vector<1x128xf32> to vector<8x128xf32>
    %6 = arith.addf %3, %5 : vector<8x128xf32>
    %7 = arith.truncf %6 : vector<8x128xf32> to vector<8x128xbf16>
    %cst_5 = arith.constant 0.000000e+00 : bf16
    %8 = vector.broadcast %cst_5 : bf16 to vector<8x128xbf16>
    %9 = arith.maximumf %7, %8 : vector<8x128xbf16>
    %c0_6 = arith.constant 0 : index
    %c0_7 = arith.constant 0 : index
    %10 = vector.load %arg4[%c0_6, %c0_7] : memref<128x64xbf16, #tpu.memory_space<vmem>>, vector<128x64xbf16>
    %cst_8 = arith.constant dense<0.000000e+00> : vector<8x64xf32>
    %11 = tpu.matmul %9, %10, %cst_8 {dimension_numbers = #tpu.dot_dimension_numbers<[1], [0], [0], [1], [0, 0, 1, 1], [], []>} : vector<8x128xbf16>, vector<128x64xbf16>, vector<8x64xf32> -> vector<8x64xf32>
    %c0_9 = arith.constant 0 : index
    %c0_10 = arith.constant 0 : index
    %12 = vector.load %arg5[%c0_9, %c0_10] : memref<1x64xf32, #tpu.memory_space<vmem>>, vector<1x64xf32>
    %13 = vector.broadcast %12 : vector<1x64xf32> to vector<8x64xf32>
    %14 = arith.addf %11, %13 : vector<8x64xf32>
    %15 = arith.truncf %14 : vector<8x64xf32> to vector<8x64xbf16>
    %cst_11 = arith.constant 0.000000e+00 : bf16
    %16 = vector.broadcast %cst_11 : bf16 to vector<8x64xbf16>
    %17 = arith.maximumf %15, %16 : vector<8x64xbf16>
    %c0_12 = arith.constant 0 : index
    %c0_13 = arith.constant 0 : index
    %18 = vector.load %arg6[%c0_12, %c0_13] : memref<64x4xbf16, #tpu.memory_space<vmem>>, vector<64x4xbf16>
    %cst_14 = arith.constant dense<0.000000e+00> : vector<8x4xf32>
    %19 = tpu.matmul %17, %18, %cst_14 {dimension_numbers = #tpu.dot_dimension_numbers<[1], [0], [0], [1], [0, 0, 1, 1], [], []>} : vector<8x64xbf16>, vector<64x4xbf16>, vector<8x4xf32> -> vector<8x4xf32>
    %c0_15 = arith.constant 0 : index
    %c0_16 = arith.constant 0 : index
    %20 = vector.load %arg7[%c0_15, %c0_16] : memref<1x4xf32, #tpu.memory_space<vmem>>, vector<1x4xf32>
    %21 = vector.broadcast %20 : vector<1x4xf32> to vector<8x4xf32>
    %22 = arith.addf %19, %21 : vector<8x4xf32>
    %c0_17 = arith.constant 0 : index
    %c0_18 = arith.constant 0 : index
    %23 = vector.load %arg8[%c0_17, %c0_18] : memref<8x4xf32, #tpu.memory_space<vmem>>, vector<8x4xf32>
    tpu.vector_store %arg8[%c0_17, %c0_18], %22 {strides = array<i32>} : memref<8x4xf32, #tpu.memory_space<vmem>>, vector<8x4xf32>,
    return
  }
  func.func @transform_0(%arg0: i32) -> (i32, i32) {
    %c0_i32 = arith.constant 0 : i32
    %c0_i32_0 = arith.constant 0 : i32
    return %arg0, %c0_i32 : i32, i32
  }
  func.func @transform_1(%arg0: i32) -> (i32, i32) {
    %c0_i32 = arith.constant 0 : i32
    %c0_i32_0 = arith.constant 0 : i32
    %c0_i32_1 = arith.constant 0 : i32
    return %c0_i32, %c0_i32_0 : i32, i32
  }
  func.func @transform_2(%arg0: i32) -> (i32, i32) {
    %c0_i32 = arith.constant 0 : i32
    %c0_i32_0 = arith.constant 0 : i32
    %c0_i32_1 = arith.constant 0 : i32
    return %c0_i32, %c0_i32_0 : i32, i32
  }
  func.func @transform_3(%arg0: i32) -> (i32, i32) {
    %c0_i32 = arith.constant 0 : i32
    %c0_i32_0 = arith.constant 0 : i32
    %c0_i32_1 = arith.constant 0 : i32
    return %c0_i32, %c0_i32_0 : i32, i32
  }
  func.func @transform_4(%arg0: i32) -> (i32, i32) {
    %c0_i32 = arith.constant 0 : i32
    %c0_i32_0 = arith.constant 0 : i32
    %c0_i32_1 = arith.constant 0 : i32
    return %c0_i32, %c0_i32_0 : i32, i32
  }
  func.func @transform_5(%arg0: i32) -> (i32, i32) {
    %c0_i32 = arith.constant 0 : i32
    %c0_i32_0 = arith.constant 0 : i32
    %c0_i32_1 = arith.constant 0 : i32
    return %c0_i32, %c0_i32_0 : i32, i32
  }
  func.func @transform_6(%arg0: i32) -> (i32, i32) {
    %c0_i32 = arith.constant 0 : i32
    %c0_i32_0 = arith.constant 0 : i32
    %c0_i32_1 = arith.constant 0 : i32
    return %c0_i32, %c0_i32_0 : i32, i32
  }
  func.func @transform_7(%arg0: i32) -> (i32, i32) {
    %c0_i32 = arith.constant 0 : i32
    %c0_i32_0 = arith.constant 0 : i32
    return %arg0, %c0_i32 : i32, i32
  }
}

</mosaic_0001>

<bundles_post_ra>
// kernel: tpu_custom_call.1
= control target key start
LH: loop header
LB: loop body
LE: loop exit
PB: predicated region body
PF: predicated region fallthrough
CT: control target
= control target key end

     0   :  { %v393_v0 = vmov 0.0   ;;  %vm394_vm0 = vmmov 0   ;;  %vm52_vm1 = vcmask 261120   ;;  %v395_v22 = vmov 0   ;;  %s496_s1 = inlined_call_operand.vmem [shape: bf16[32,128], index: 1, kind: input, shape index: {}]   ;;  %s497_s0 = inlined_call_operand.vmem [shape: f32[8,32], index: 0, kind: input, shape index: {}]   ;;  %s498_s3 = inlined_call_operand.vmem [shape: bf16[128,64], index: 3, kind: input, shape index: {}]   ;;  %s499_s5 = inlined_call_operand.vmem [shape: bf16[64,4], index: 5, kind: input, shape index: {}]   ;;  %s500_s2 = inlined_call_operand.vmem [shape: f32[1,128], index: 2, kind: input, shape index: {}]   ;;  %s501_s4 = inlined_call_operand.vmem [shape: f32[1,64], index: 4, kind: input, shape index: {}]   ;;  %s502_s6 = inlined_call_operand.vmem [shape: f32[1,4], index: 6, kind: input, shape index: {}]   ;;  %s503_s7 = inlined_call_operand.vmem [shape: f32[8,4], index: 7, kind: output, shape index: {}]  }
   0x1   :  { %336 = vmatprep.subr.bf16.mxu0 %v393_v0  ;;  %v379_v1 = vld [vmem:[%s496_s1] sm:$0xff]   ;;  %340 = vmatprep.mubr.msk.bf16.mxu0 %vm394_vm0, %v393_v0  ;;  %v380_v2 = vld [vmem:[%s496_s1 + $0x8] sm:$0xff]   ;;  %v383_v7 = vld [vmem:[%s498_s3 + $0x10] sm:$0xff]   ;;  %vm250_vm2 = vcmask 523264   ;;  %vm294_vm3 = vcmask 31744  }
   0x2   :  { %344 = vmatprep.subr.bf16.mxu1 %v393_v0  ;;  %360 = vmatprep.mubr.msk.bf16.mxu1 %vm394_vm0, %v393_v0  ;;  %v27_v3 = vld [vmem:[%s497_s0] sm:$0xff]  ;;  %v382_v6 = vld [vmem:[%s498_s3 + $0x8] sm:$0xff]   ;;  %v384_v8 = vld [vmem:[%s498_s3 + $0x18] sm:$0xff]  }
   0x3   :  { %337 = vmatpush3.bf16.msra.mxu0 %v379_v1  ;;  %v381_v4 = vld [vmem:[%s498_s3] sm:$0xff]   ;;  %v28_v5 = vpack.c.bf16 %v27_v3, %v27_v3  ;;  %v386_v10 = vld [vmem:[%s498_s3 + $0x28] sm:$0xff]   ;;  %v387_v11 = vld [vmem:[%s498_s3 + $0x30] sm:$0xff]  }
   0x4   :  { %338 = vmatprep.subr.bf16.mxu0 %v393_v0  ;;  %345 = vmatpush3.bf16.msra.mxu1 %v381_v4  ;;  %v385_v9 = vld [vmem:[%s498_s3 + $0x20] sm:$0xff]   ;;  %v388_v12 = vld [vmem:[%s498_s3 + $0x38] sm:$0xff]   ;;  %v390_v14 = vld [vmem:[%s499_s5 + $0x8] sm:$0xff]  }
   0x5   :  { %346 = vmatprep.subr.bf16.mxu1 %v393_v0  ;;  %v389_v13 = vld [vmem:[%s499_s5] sm:$0xff]   ;;  %v391_v24 = vld [vmem:[%s499_s5 + $0x10] sm:$0xff]   ;;  %v392_v25 = vld [vmem:[%s499_s5 + $0x18] sm:$0xff]  }
   0x6   :  { %v300_v15 = vld [vmem:[%s500_s2] ss:$0 sm:$0xff] }
   0x7   :  { %339 = vmatpush3.bf16.msra.mxu0 %v380_v2  ;;  %v304_v26 = vld [vmem:[%s501_s4] ss:$0 sm:$0xff] }
   0x8   :  { %364 = vmatprep.subr.bf16.mxu0 %v393_v0  ;;  %347 = vmatpush3.bf16.msra.mxu1 %v382_v6  ;;  %v313_v34 = vld [vmem:[%s502_s6] ss:$0 sm:$0xff] }
   0x9   :  { %348 = vmatprep.subr.bf16.mxu1 %v393_v0 }
   0xa   :  { %341 = vmatmul.mubr.msk.bf16.vlgmr.msra.gmra.mrb[0].mxu0 %vm52_vm1, %v28_v5 }
   0xb   :  { %372 = vmatprep.mubr.msk.bf16.mxu0 %vm394_vm0, %v393_v0  ;;  %365 = vmatpush3.bf16.msra.mxu0 %v389_v13 }
   0xc   :  { %349 = vmatpush3.bf16.msra.mxu1 %v383_v7  ;;  %366 = vmatprep.subr.bf16.mxu0 %v393_v0 }
   0xd   :  { %350 = vmatprep.subr.bf16.mxu1 %v393_v0 }
   0xf   :  { %367 = vmatpush3.bf16.msra.mxu0 %v390_v14 }
  0x10   :  { %351 = vmatpush3.bf16.msra.mxu1 %v384_v8  ;;  %368 = vmatprep.subr.bf16.mxu0 %v393_v0 }
  0x11   :  { %352 = vmatprep.subr.bf16.mxu1 %v393_v0 }
  0x13   :  { %369 = vmatpush3.bf16.msra.mxu0 %v391_v24 }
  0x14   :  { %353 = vmatpush3.bf16.msra.mxu1 %v385_v9  ;;  %370 = vmatprep.subr.bf16.mxu0 %v393_v0 }
  0x15   :  { %354 = vmatprep.subr.bf16.mxu1 %v393_v0 }
  0x17   :  { %371 = vmatpush3.bf16.msra.mxu0 %v392_v25 }
  0x18   :  { %355 = vmatpush3.bf16.msra.mxu1 %v386_v10 }
  0x19   :  { %356 = vmatprep.subr.bf16.mxu1 %v393_v0 }
  0x1c   :  { %357 = vmatpush3.bf16.msra.mxu1 %v387_v11 }
  0x1d   :  { %358 = vmatprep.subr.bf16.mxu1 %v393_v0 }
  0x20   :  { %359 = vmatpush3.bf16.msra.mxu1 %v388_v12 }
  0xdd   :  { %v90_v16 = vpop.f32.mrb[0].mxu0 }
  0xde   :  { %v91_v17 = vadd.f32 %v300_v15, %v90_v16  ;;  %v342_v18 = vpop.f32.mrb[1].mxu0 }
  0xdf   :  { %v93_v19 = vpop.f32.mrb[2].mxu0 }
  0xe0   :  { %v96_v20 = vpack.c.bf16 %v91_v17, %v91_v17  ;;  %v343_v21 = vpop.f32.mrb[3].mxu0 }
  0xe2   :  { %v97_v23 = vmax.bf16 %v395_v22, %v96_v20 }
  0xe4   :  { %361 = vmatmul.mubr.bf16.vlgmr.msra.gmra.mrb[0].mxu1 %v97_v23 }
 0x1b7   :  { %v203_v27 = vpop.f32.mrb[0].mxu1 }
 0x1b8   :  { %v204_v28 = vadd.f32 %v304_v26, %v203_v27  ;;  %v362_v29 = vpop.f32.mrb[1].mxu1 }
 0x1b9   :  { %v206_v30 = vpop.f32.mrb[2].mxu1 }
 0x1ba   :  { %v209_v31 = vpack.c.bf16 %v204_v28, %v204_v28  ;;  %v363_v32 = vpop.f32.mrb[3].mxu1 }
 0x1bc   :  { %v210_v33 = vmax.bf16 %v395_v22, %v209_v31 }
 0x1be   :  { %373 = vmatmul.mubr.msk.bf16.vlgmr.msra.gmra.mrb[4].mxu0 %vm250_vm2, %v210_v33 }
 0x291   :  { %v288_v35 = vpop.f32.mrb[4].mxu0 }
 0x292   :  { %v289_v36 = vadd.f32 %v313_v34, %v288_v35  ;;  %v374_v37 = vpop.f32.mrb[5].mxu0 }
 0x293   :  { %v291_v38 = vpop.f32.mrb[6].mxu0 }
 0x294   :  { %295 = vst.msk [vmem:[%s503_s7] sm:$0xff] %vm294_vm3, %v289_v36  ;;  %v375_v39 = vpop.f32.mrb[7].mxu0 }

</bundles_post_ra>
